<compile_context>
chip_gen: v5e
topology: v5e:2x2
jax: 0.10.0
libtpu: 0.0.40
codegen_flags: <defaults>
</compile_context>

<pallas_src>
import functools
import math

import jax
import jax.numpy as jnp
from jax.experimental import pallas as pl
from jax.experimental.pallas import tpu as pltpu


def _mha_kernel(x_ref, wqkv_ref, wo_ref, bo_ref, o_ref, *,
                num_heads, head_dim, compute_dtype):
    blk_b, t, _ = x_ref.shape
    hs = num_heads * head_dim
    scale = 1.0 / math.sqrt(head_dim)

    # Fused QKV projection: one bf16 MXU pass over a (blk_b*T, E) slab.
    x2 = x_ref[...].reshape(blk_b * t, -1)                        # bf16 [B*T, E]
    qkv = jnp.dot(x2, wqkv_ref[...],
                  preferred_element_type=jnp.float32)             # f32 [B*T, 3*HS]
    qkv = qkv.reshape(blk_b, t, 3 * hs)

    head_outs = []
    for h in range(num_heads):                                    # unrolled; heads independent
        q_sl = slice(h * head_dim, (h + 1) * head_dim)
        k_sl = slice(hs + h * head_dim, hs + (h + 1) * head_dim)
        v_sl = slice(2 * hs + h * head_dim, 2 * hs + (h + 1) * head_dim)
        qh = (qkv[:, :, q_sl] * scale).astype(compute_dtype)      # bf16 [B, T, Dh]
        kh = qkv[:, :, k_sl].astype(compute_dtype)                # bf16 [B, T, Dh]
        vh = qkv[:, :, v_sl].astype(compute_dtype)                # bf16 [B, T, Dh]

        # Batched q k^T without materializing k.T; f32 accumulation.
        s = jnp.einsum("bqd,bkd->bqk", qh, kh,
                       preferred_element_type=jnp.float32)        # f32 [B, T, T]
        m = jnp.max(s, axis=-1, keepdims=True)
        p = jnp.exp(s - m)
        l = jnp.sum(p, axis=-1, keepdims=True)
        acc = jnp.einsum("bqk,bkd->bqd", p.astype(compute_dtype), vh,
                         preferred_element_type=jnp.float32)      # f32 [B, T, Dh]
        # Normalize after P@V (cheaper than scaling p) using the EUP reciprocal.
        head_outs.append(acc * pl.reciprocal(l, approx=True))

    fetched = jnp.concatenate(head_outs, axis=-1)                 # f32 [B, T, HS]
    out = jnp.dot(fetched.reshape(blk_b * t, hs).astype(compute_dtype),
                  wo_ref[...], preferred_element_type=jnp.float32)
    out = out + bo_ref[...]                                       # f32 bias add
    o_ref[...] = out.reshape(blk_b, t, -1).astype(o_ref.dtype)


def _choose_block_b(batch):
    # Largest divisor of `batch` that is <= 8 while keeping >= 2 grid steps
    # (so the "parallel" grid axis can be sharded across TensorCores).
    best = 1
    for cand in range(1, min(batch, 8) + 1):
        if batch % cand == 0 and batch // cand >= 2:
            best = cand
    return best


def multi_head_attention(query, wq, wk, wv, wo, bo, *, num_heads,
                         key=None, value=None,
                         compute_dtype=jnp.bfloat16, block_b=None):
    """Forward of MultiHeadAttentionKernel (kernel=None path).

    query: [B, T, E]; wq/wk/wv: [E, HS]; wo: [E_out, HS] (nn.Linear weight);
    bo: [E_out]. Returns [B, T, E_out] float32.
    """
    # TODO(synk): cross-attention with key/value tensors distinct from query is
    # not implemented; the module's default key=value=query path is covered.
    if key is not None or value is not None:
        raise NotImplementedError("self-attention path only")

    batch, t, e = query.shape
    hs = wq.shape[1]
    assert hs % num_heads == 0
    head_dim = hs // num_heads
    e_out = wo.shape[0]

    # Fuse q/k/v into one weight; out_proj as [HS, E_out] (PyTorch Linear: x @ W.T + b).
    w_qkv = jnp.concatenate([wq, wk, wv], axis=1).astype(compute_dtype)   # [E, 3*HS]
    w_o = wo.T.astype(compute_dtype)                                      # [HS, E_out]
    b_o = bo.reshape(1, e_out).astype(jnp.float32)
    x = query.astype(compute_dtype)

    if block_b is None:
        block_b = _choose_block_b(batch)
    assert batch % block_b == 0
    grid = (batch // block_b,)

    kernel = functools.partial(_mha_kernel, num_heads=num_heads,
                               head_dim=head_dim, compute_dtype=compute_dtype)

    flops = 2 * batch * t * (e * 3 * hs + 2 * t * hs + hs * e_out)
    bytes_accessed = (batch * t * e * 2 + (e * 3 * hs + hs * e_out) * 2
                      + e_out * 4 + batch * t * e_out * 4)

    return pl.pallas_call(
        kernel,
        out_shape=jax.ShapeDtypeStruct((batch, t, e_out), jnp.float32),
        grid_spec=pltpu.PrefetchScalarGridSpec(
            num_scalar_prefetch=0,
            grid=grid,
            in_specs=[
                pl.BlockSpec((block_b, t, e), lambda n: (n, 0, 0)),
                pl.BlockSpec((e, 3 * hs), lambda n: (0, 0)),   # resident across grid
                pl.BlockSpec((hs, e_out), lambda n: (0, 0)),   # resident across grid
                pl.BlockSpec((1, e_out), lambda n: (0, 0)),    # resident across grid
            ],
            out_specs=pl.BlockSpec((block_b, t, e_out), lambda n: (n, 0, 0)),
        ),
        compiler_params=pltpu.CompilerParams(
            dimension_semantics=("parallel",),
        ),
        cost_estimate=pl.CostEstimate(
            flops=flops,
            transcendentals=batch * num_heads * t * t,
            bytes_accessed=bytes_accessed,
        ),
    )(x, w_qkv, w_o, b_o)


def _reference(query, wq, wk, wv, wo, bo, *, num_heads, head_dim,
               compute_dtype=jnp.bfloat16):
    """Pure-JAX mirror of the PyTorch forward (same bf16 cast / f32 accumulation)."""
    b, t, e = query.shape
    hs = num_heads * head_dim
    x = query.astype(compute_dtype)

    def proj(w):
        return jnp.einsum("bte,eh->bth", x, w.astype(compute_dtype),
                          preferred_element_type=jnp.float32)

    def split_heads(z):  # [B, T, HS] -> [B, H, T, Dh]
        return z.reshape(b, t, num_heads, head_dim).transpose(0, 2, 1, 3)

    q = split_heads(proj(wq)) / math.sqrt(head_dim)
    k, v = split_heads(proj(wk)), split_heads(proj(wv))
    s = jnp.einsum("bhqd,bhkd->bhqk",
                   q.astype(compute_dtype), k.astype(compute_dtype),
                   preferred_element_type=jnp.float32)
    p = jax.nn.softmax(s, axis=-1)
    f = jnp.einsum("bhqk,bhkd->bhqd",
                   p.astype(compute_dtype), v.astype(compute_dtype),
                   preferred_element_type=jnp.float32)
    f = f.transpose(0, 2, 1, 3).reshape(b, t, hs)
    out = jnp.einsum("bth,oh->bto", f.astype(compute_dtype), wo.astype(compute_dtype),
                     preferred_element_type=jnp.float32) + bo.astype(jnp.float32)
    return out


if __name__ == "__main__":
    # Small shapes consistent with the module: embed_dim=32, num_heads=4,
    # hiddenFactor=1 -> hiddenSize=32, head_dim=8; batch=2, seq=8.
    B, T, EMBED, HEADS = 2, 8, 32, 4
    hidden = math.ceil(1 * EMBED)
    head_dim = math.ceil(hidden / HEADS)
    hidden = head_dim * HEADS

    root = jax.random.PRNGKey(0)
    kq, kk, kv, kw, kb, kx = jax.random.split(root, 6)

    def xavier_uniform(k, shape):
        bound = math.sqrt(6.0 / (shape[0] + shape[1]))
        return jax.random.uniform(k, shape, jnp.float32, -bound, bound)

    wq = xavier_uniform(kq, (EMBED, hidden))
    wk = xavier_uniform(kk, (EMBED, hidden))
    wv = xavier_uniform(kv, (EMBED, hidden))
    # out_proj = nn.Linear(hidden, EMBED): weight [EMBED, hidden], bias [EMBED]
    lin_bound = 1.0 / math.sqrt(hidden)
    wo = jax.random.uniform(kw, (EMBED, hidden), jnp.float32, -lin_bound, lin_bound)
    bo = jax.random.uniform(kb, (EMBED,), jnp.float32, -lin_bound, lin_bound)

    query = jax.random.normal(kx, (B, T, EMBED), jnp.float32)

    out = multi_head_attention(query, wq, wk, wv, wo, bo, num_heads=HEADS)
    out = jax.block_until_ready(out)

    ref = _reference(query, wq, wk, wv, wo, bo, num_heads=HEADS, head_dim=head_dim)
    assert out.shape == (B, T, EMBED), out.shape
    max_err = float(jnp.max(jnp.abs(out - ref)))
    assert jnp.allclose(out, ref, atol=2e-2, rtol=2e-2), max_err

    print("KERNEL_OK")
</pallas_src>

<mosaic_0001>
module attributes {stable_mosaic.version = 11 : i64} {
  func.func @_mha_kernel(%arg0: i32, %arg1: memref<1x8x32xbf16, #tpu.memory_space<vmem>>, %arg2: memref<32x96xbf16, #tpu.memory_space<vmem>>, %arg3: memref<32x32xbf16, #tpu.memory_space<vmem>>, %arg4: memref<1x32xf32, #tpu.memory_space<vmem>>, %arg5: memref<1x8x32xf32, #tpu.memory_space<vmem>>) attributes {dimension_semantics = [#tpu.dimension_semantics<parallel>], iteration_bounds = array<i64: 2>, scalar_prefetch = 0 : i64, scratch_operands = 0 : i64, tpu.core_type = #tpu.core_type<tc>, window_params = [{transform_indices = @transform_0, window_bounds = array<i64: 1, 8, 32>}, {pipeline_mode = #tpu.pipeline_mode<synchronous>, transform_indices = @transform_1, window_bounds = array<i64: 32, 96>}, {pipeline_mode = #tpu.pipeline_mode<synchronous>, transform_indices = @transform_2, window_bounds = array<i64: 32, 32>}, {pipeline_mode = #tpu.pipeline_mode<synchronous>, transform_indices = @transform_3, window_bounds = array<i64: 1, 32>}, {transform_indices = @transform_4, window_bounds = array<i64: 1, 8, 32>}]} {
    %c0 = arith.constant 0 : index
    %c0_0 = arith.constant 0 : index
    %c0_1 = arith.constant 0 : index
    %0 = vector.load %arg1[%c0, %c0_0, %c0_1] : memref<1x8x32xbf16, #tpu.memory_space<vmem>>, vector<1x8x32xbf16>
    %1 = vector.shape_cast %0 : vector<1x8x32xbf16> to vector<8x32xbf16>
    %c0_2 = arith.constant 0 : index
    %c0_3 = arith.constant 0 : index
    %2 = vector.load %arg2[%c0_2, %c0_3] : memref<32x96xbf16, #tpu.memory_space<vmem>>, vector<32x96xbf16>
    %cst = arith.constant dense<0.000000e+00> : vector<8x96xf32>
    %3 = tpu.matmul %1, %2, %cst {dimension_numbers = #tpu.dot_dimension_numbers<[1], [0], [0], [1], [0, 0, 1, 1], [], []>} : vector<8x32xbf16>, vector<32x96xbf16>, vector<8x96xf32> -> vector<8x96xf32>
    %4 = vector.shape_cast %3 : vector<8x96xf32> to vector<1x8x96xf32>
    %5 = vector.extract_strided_slice %4 {offsets = [0, 0, 0], sizes = [1, 8, 8], strides = [1, 1, 1]} : vector<1x8x96xf32> to vector<1x8x8xf32>
    %cst_4 = arith.constant 0.353553385 : f32
    %6 = vector.broadcast %cst_4 : f32 to vector<1x8x8xf32>
    %7 = arith.mulf %5, %6 : vector<1x8x8xf32>
    %8 = arith.truncf %7 : vector<1x8x8xf32> to vector<1x8x8xbf16>
    %9 = vector.extract_strided_slice %4 {offsets = [0, 0, 32], sizes = [1, 8, 8], strides = [1, 1, 1]} : vector<1x8x96xf32> to vector<1x8x8xf32>
    %10 = arith.truncf %9 : vector<1x8x8xf32> to vector<1x8x8xbf16>
    %11 = vector.extract_strided_slice %4 {offsets = [0, 0, 64], sizes = [1, 8, 8], strides = [1, 1, 1]} : vector<1x8x96xf32> to vector<1x8x8xf32>
    %12 = arith.truncf %11 : vector<1x8x8xf32> to vector<1x8x8xbf16>
    "tpu.trace_start"() <{level = 10 : i32, message = "bqd,bkd->bqk"}> : () -> ()
    %cst_5 = arith.constant dense<0.000000e+00> : vector<1x8x8xf32>
    %13 = tpu.matmul %8, %10, %cst_5 {dimension_numbers = #tpu.dot_dimension_numbers<[2], [2], [1], [1], [0, 0, 0, 1, 1, 1], [0], [0]>} : vector<1x8x8xbf16>, vector<1x8x8xbf16>, vector<1x8x8xf32> -> vector<1x8x8xf32>
    "tpu.trace_stop"() : () -> ()
    %cst_6 = arith.constant dense<0xFF800000> : vector<1x8xf32>
    %14 = vector.multi_reduction <maximumf>, %13, %cst_6 [2] : vector<1x8x8xf32> to vector<1x8xf32>
    %15 = vector.shape_cast %14 : vector<1x8xf32> to vector<1x8x1xf32>
    %16 = vector.broadcast %15 : vector<1x8x1xf32> to vector<1x8x8xf32>
    %17 = arith.subf %13, %16 : vector<1x8x8xf32>
    %18 = math.exp %17 : vector<1x8x8xf32>
    %cst_7 = arith.constant dense<0.000000e+00> : vector<1x8xf32>
    %19 = vector.multi_reduction <add>, %18, %cst_7 [2] : vector<1x8x8xf32> to vector<1x8xf32>
    %20 = vector.shape_cast %19 : vector<1x8xf32> to vector<1x8x1xf32>
    %21 = arith.truncf %18 : vector<1x8x8xf32> to vector<1x8x8xbf16>
    "tpu.trace_start"() <{level = 10 : i32, message = "bqk,bkd->bqd"}> : () -> ()
    %cst_8 = arith.constant dense<0.000000e+00> : vector<1x8x8xf32>
    %22 = tpu.matmul %21, %12, %cst_8 {dimension_numbers = #tpu.dot_dimension_numbers<[2], [1], [1], [2], [0, 0, 0, 1, 1, 2], [0], [0]>} : vector<1x8x8xbf16>, vector<1x8x8xbf16>, vector<1x8x8xf32> -> vector<1x8x8xf32>
    "tpu.trace_stop"() : () -> ()
    %23 = tpu.reciprocal %20 {approx = true} : vector<1x8x1xf32> -> vector<1x8x1xf32>
    %24 = vector.broadcast %23 : vector<1x8x1xf32> to vector<1x8x8xf32>
    %25 = arith.mulf %22, %24 : vector<1x8x8xf32>
    %26 = vector.extract_strided_slice %4 {offsets = [0, 0, 8], sizes = [1, 8, 8], strides = [1, 1, 1]} : vector<1x8x96xf32> to vector<1x8x8xf32>
    %cst_9 = arith.constant 0.353553385 : f32
    %27 = vector.broadcast %cst_9 : f32 to vector<1x8x8xf32>
    %28 = arith.mulf %26, %27 : vector<1x8x8xf32>
    %29 = arith.truncf %28 : vector<1x8x8xf32> to vector<1x8x8xbf16>
    %30 = vector.extract_strided_slice %4 {offsets = [0, 0, 40], sizes = [1, 8, 8], strides = [1, 1, 1]} : vector<1x8x96xf32> to vector<1x8x8xf32>
    %31 = arith.truncf %30 : vector<1x8x8xf32> to vector<1x8x8xbf16>
    %32 = vector.extract_strided_slice %4 {offsets = [0, 0, 72], sizes = [1, 8, 8], strides = [1, 1, 1]} : vector<1x8x96xf32> to vector<1x8x8xf32>
    %33 = arith.truncf %32 : vector<1x8x8xf32> to vector<1x8x8xbf16>
    "tpu.trace_start"() <{level = 10 : i32, message = "bqd,bkd->bqk"}> : () -> ()
    %cst_10 = arith.constant dense<0.000000e+00> : vector<1x8x8xf32>
    %34 = tpu.matmul %29, %31, %cst_10 {dimension_numbers = #tpu.dot_dimension_numbers<[2], [2], [1], [1], [0, 0, 0, 1, 1, 1], [0], [0]>} : vector<1x8x8xbf16>, vector<1x8x8xbf16>, vector<1x8x8xf32> -> vector<1x8x8xf32>
    "tpu.trace_stop"() : () -> ()
    %cst_11 = arith.constant dense<0xFF800000> : vector<1x8xf32>
    %35 = vector.multi_reduction <maximumf>, %34, %cst_11 [2] : vector<1x8x8xf32> to vector<1x8xf32>
    %36 = vector.shape_cast %35 : vector<1x8xf32> to vector<1x8x1xf32>
    %37 = vector.broadcast %36 : vector<1x8x1xf32> to vector<1x8x8xf32>
    %38 = arith.subf %34, %37 : vector<1x8x8xf32>
    %39 = math.exp %38 : vector<1x8x8xf32>
    %cst_12 = arith.constant dense<0.000000e+00> : vector<1x8xf32>
    %40 = vector.multi_reduction <add>, %39, %cst_12 [2] : vector<1x8x8xf32> to vector<1x8xf32>
    %41 = vector.shape_cast %40 : vector<1x8xf32> to vector<1x8x1xf32>
    %42 = arith.truncf %39 : vector<1x8x8xf32> to vector<1x8x8xbf16>
    "tpu.trace_start"() <{level = 10 : i32, message = "bqk,bkd->bqd"}> : () -> ()
    %cst_13 = arith.constant dense<0.000000e+00> : vector<1x8x8xf32>
    %43 = tpu.matmul %42, %33, %cst_13 {dimension_numbers = #tpu.dot_dimension_numbers<[2], [1], [1], [2], [0, 0, 0, 1, 1, 2], [0], [0]>} : vector<1x8x8xbf16>, vector<1x8x8xbf16>, vector<1x8x8xf32> -> vector<1x8x8xf32>
    "tpu.trace_stop"() : () -> ()
    %44 = tpu.reciprocal %41 {approx = true} : vector<1x8x1xf32> -> vector<1x8x1xf32>
    %45 = vector.broadcast %44 : vector<1x8x1xf32> to vector<1x8x8xf32>
    %46 = arith.mulf %43, %45 : vector<1x8x8xf32>
    %47 = vector.extract_strided_slice %4 {offsets = [0, 0, 16], sizes = [1, 8, 8], strides = [1, 1, 1]} : vector<1x8x96xf32> to vector<1x8x8xf32>
    %cst_14 = arith.constant 0.353553385 : f32
    %48 = vector.broadcast %cst_14 : f32 to vector<1x8x8xf32>
    %49 = arith.mulf %47, %48 : vector<1x8x8xf32>
    %50 = arith.truncf %49 : vector<1x8x8xf32> to vector<1x8x8xbf16>
    %51 = vector.extract_strided_slice %4 {offsets = [0, 0, 48], sizes = [1, 8, 8], strides = [1, 1, 1]} : vector<1x8x96xf32> to vector<1x8x8xf32>
    %52 = arith.truncf %51 : vector<1x8x8xf32> to vector<1x8x8xbf16>
    %53 = vector.extract_strided_slice %4 {offsets = [0, 0, 80], sizes = [1, 8, 8], strides = [1, 1, 1]} : vector<1x8x96xf32> to vector<1x8x8xf32>
    %54 = arith.truncf %53 : vector<1x8x8xf32> to vector<1x8x8xbf16>
    "tpu.trace_start"() <{level = 10 : i32, message = "bqd,bkd->bqk"}> : () -> ()
    %cst_15 = arith.constant dense<0.000000e+00> : vector<1x8x8xf32>
    %55 = tpu.matmul %50, %52, %cst_15 {dimension_numbers = #tpu.dot_dimension_numbers<[2], [2], [1], [1], [0, 0, 0, 1, 1, 1], [0], [0]>} : vector<1x8x8xbf16>, vector<1x8x8xbf16>, vector<1x8x8xf32> -> vector<1x8x8xf32>
    "tpu.trace_stop"() : () -> ()
    %cst_16 = arith.constant dense<0xFF800000> : vector<1x8xf32>
    %56 = vector.multi_reduction <maximumf>, %55, %cst_16 [2] : vector<1x8x8xf32> to vector<1x8xf32>
    %57 = vector.shape_cast %56 : vector<1x8xf32> to vector<1x8x1xf32>
    %58 = vector.broadcast %57 : vector<1x8x1xf32> to vector<1x8x8xf32>
    %59 = arith.subf %55, %58 : vector<1x8x8xf32>
    %60 = math.exp %59 : vector<1x8x8xf32>
    %cst_17 = arith.constant dense<0.000000e+00> : vector<1x8xf32>
    %61 = vector.multi_reduction <add>, %60, %cst_17 [2] : vector<1x8x8xf32> to vector<1x8xf32>
    %62 = vector.shape_cast %61 : vector<1x8xf32> to vector<1x8x1xf32>
    %63 = arith.truncf %60 : vector<1x8x8xf32> to vector<1x8x8xbf16>
    "tpu.trace_start"() <{level = 10 : i32, message = "bqk,bkd->bqd"}> : () -> ()
    %cst_18 = arith.constant dense<0.000000e+00> : vector<1x8x8xf32>
    %64 = tpu.matmul %63, %54, %cst_18 {dimension_numbers = #tpu.dot_dimension_numbers<[2], [1], [1], [2], [0, 0, 0, 1, 1, 2], [0], [0]>} : vector<1x8x8xbf16>, vector<1x8x8xbf16>, vector<1x8x8xf32> -> vector<1x8x8xf32>
    "tpu.trace_stop"() : () -> ()
    %65 = tpu.reciprocal %62 {approx = true} : vector<1x8x1xf32> -> vector<1x8x1xf32>
    %66 = vector.broadcast %65 : vector<1x8x1xf32> to vector<1x8x8xf32>
    %67 = arith.mulf %64, %66 : vector<1x8x8xf32>
    %68 = vector.extract_strided_slice %4 {offsets = [0, 0, 24], sizes = [1, 8, 8], strides = [1, 1, 1]} : vector<1x8x96xf32> to vector<1x8x8xf32>
    %cst_19 = arith.constant 0.353553385 : f32
    %69 = vector.broadcast %cst_19 : f32 to vector<1x8x8xf32>
    %70 = arith.mulf %68, %69 : vector<1x8x8xf32>
    %71 = arith.truncf %70 : vector<1x8x8xf32> to vector<1x8x8xbf16>
    %72 = vector.extract_strided_slice %4 {offsets = [0, 0, 56], sizes = [1, 8, 8], strides = [1, 1, 1]} : vector<1x8x96xf32> to vector<1x8x8xf32>
    %73 = arith.truncf %72 : vector<1x8x8xf32> to vector<1x8x8xbf16>
    %74 = vector.extract_strided_slice %4 {offsets = [0, 0, 88], sizes = [1, 8, 8], strides = [1, 1, 1]} : vector<1x8x96xf32> to vector<1x8x8xf32>
    %75 = arith.truncf %74 : vector<1x8x8xf32> to vector<1x8x8xbf16>
    "tpu.trace_start"() <{level = 10 : i32, message = "bqd,bkd->bqk"}> : () -> ()
    %cst_20 = arith.constant dense<0.000000e+00> : vector<1x8x8xf32>
    %76 = tpu.matmul %71, %73, %cst_20 {dimension_numbers = #tpu.dot_dimension_numbers<[2], [2], [1], [1], [0, 0, 0, 1, 1, 1], [0], [0]>} : vector<1x8x8xbf16>, vector<1x8x8xbf16>, vector<1x8x8xf32> -> vector<1x8x8xf32>
    "tpu.trace_stop"() : () -> ()
    %cst_21 = arith.constant dense<0xFF800000> : vector<1x8xf32>
    %77 = vector.multi_reduction <maximumf>, %76, %cst_21 [2] : vector<1x8x8xf32> to vector<1x8xf32>
    %78 = vector.shape_cast %77 : vector<1x8xf32> to vector<1x8x1xf32>
    %79 = vector.broadcast %78 : vector<1x8x1xf32> to vector<1x8x8xf32>
    %80 = arith.subf %76, %79 : vector<1x8x8xf32>
    %81 = math.exp %80 : vector<1x8x8xf32>
    %cst_22 = arith.constant dense<0.000000e+00> : vector<1x8xf32>
    %82 = vector.multi_reduction <add>, %81, %cst_22 [2] : vector<1x8x8xf32> to vector<1x8xf32>
    %83 = vector.shape_cast %82 : vector<1x8xf32> to vector<1x8x1xf32>
    %84 = arith.truncf %81 : vector<1x8x8xf32> to vector<1x8x8xbf16>
    "tpu.trace_start"() <{level = 10 : i32, message = "bqk,bkd->bqd"}> : () -> ()
    %cst_23 = arith.constant dense<0.000000e+00> : vector<1x8x8xf32>
    %85 = tpu.matmul %84, %75, %cst_23 {dimension_numbers = #tpu.dot_dimension_numbers<[2], [1], [1], [2], [0, 0, 0, 1, 1, 2], [0], [0]>} : vector<1x8x8xbf16>, vector<1x8x8xbf16>, vector<1x8x8xf32> -> vector<1x8x8xf32>
    "tpu.trace_stop"() : () -> ()
    %86 = tpu.reciprocal %83 {approx = true} : vector<1x8x1xf32> -> vector<1x8x1xf32>
    %87 = vector.broadcast %86 : vector<1x8x1xf32> to vector<1x8x8xf32>
    %88 = arith.mulf %85, %87 : vector<1x8x8xf32>
    %89 = tpu.concatenate %25, %46, %67, %88 in 2 : vector<1x8x8xf32>, vector<1x8x8xf32>, vector<1x8x8xf32>, vector<1x8x8xf32> -> vector<1x8x32xf32>
    %90 = vector.shape_cast %89 : vector<1x8x32xf32> to vector<8x32xf32>
    %91 = arith.truncf %90 : vector<8x32xf32> to vector<8x32xbf16>
    %c0_24 = arith.constant 0 : index
    %c0_25 = arith.constant 0 : index
    %92 = vector.load %arg3[%c0_24, %c0_25] : memref<32x32xbf16, #tpu.memory_space<vmem>>, vector<32x32xbf16>
    %cst_26 = arith.constant dense<0.000000e+00> : vector<8x32xf32>
    %93 = tpu.matmul %91, %92, %cst_26 {dimension_numbers = #tpu.dot_dimension_numbers<[1], [0], [0], [1], [0, 0, 1, 1], [], []>} : vector<8x32xbf16>, vector<32x32xbf16>, vector<8x32xf32> -> vector<8x32xf32>
    %c0_27 = arith.constant 0 : index
    %c0_28 = arith.constant 0 : index
    %94 = vector.load %arg4[%c0_27, %c0_28] : memref<1x32xf32, #tpu.memory_space<vmem>>, vector<1x32xf32>
    %95 = vector.broadcast %94 : vector<1x32xf32> to vector<8x32xf32>
    %96 = arith.addf %93, %95 : vector<8x32xf32>
    %97 = vector.shape_cast %96 : vector<8x32xf32> to vector<1x8x32xf32>
    %c0_29 = arith.constant 0 : index
    %c0_30 = arith.constant 0 : index
    %c0_31 = arith.constant 0 : index
    %98 = vector.load %arg5[%c0_29, %c0_30, %c0_31] : memref<1x8x32xf32, #tpu.memory_space<vmem>>, vector<1x8x32xf32>
    tpu.vector_store %arg5[%c0_29, %c0_30, %c0_31], %97 {strides = array<i32>} : memref<1x8x32xf32, #tpu.memory_space<vmem>>, vector<1x8x32xf32>,
    return
  }
  func.func @transform_0(%arg0: i32) -> (i32, i32, i32) {
    %c0_i32 = arith.constant 0 : i32
    %c0_i32_0 = arith.constant 0 : i32
    %c0_i32_1 = arith.constant 0 : i32
    return %arg0, %c0_i32, %c0_i32_0 : i32, i32, i32
  }
  func.func @transform_1(%arg0: i32) -> (i32, i32) {
    %c0_i32 = arith.constant 0 : i32
    %c0_i32_0 = arith.constant 0 : i32
    %c0_i32_1 = arith.constant 0 : i32
    return %c0_i32, %c0_i32_0 : i32, i32
  }
  func.func @transform_2(%arg0: i32) -> (i32, i32) {
    %c0_i32 = arith.constant 0 : i32
    %c0_i32_0 = arith.constant 0 : i32
    %c0_i32_1 = arith.constant 0 : i32
    return %c0_i32, %c0_i32_0 : i32, i32
  }
  func.func @transform_3(%arg0: i32) -> (i32, i32) {
    %c0_i32 = arith.constant 0 : i32
    %c0_i32_0 = arith.constant 0 : i32
    %c0_i32_1 = arith.constant 0 : i32
    return %c0_i32, %c0_i32_0 : i32, i32
  }
  func.func @transform_4(%arg0: i32) -> (i32, i32, i32) {
    %c0_i32 = arith.constant 0 : i32
    %c0_i32_0 = arith.constant 0 : i32
    %c0_i32_1 = arith.constant 0 : i32
    return %arg0, %c0_i32, %c0_i32_0 : i32, i32, i32
  }
}

</mosaic_0001>

<bundles_post_ra>
// kernel: tpu_custom_call.1
= control target key start
LH: loop header
LB: loop body
LE: loop exit
PB: predicated region body
PF: predicated region fallthrough
CT: control target
= control target key end

     0   :  { %9 = vsyncpa [#allocation3], 0  ;;  %s1214_s0 = inlined_call_operand.hbm [shape: bf16[2,8,32], index: 0, kind: input, shape index: {}]   ;;  %s1215_s1 = inlined_call_operand.hbm [shape: bf16[32,96], index: 1, kind: input, shape index: {}]   ;;  %s1216_s2 = inlined_call_operand.hbm [shape: bf16[32,32], index: 2, kind: input, shape index: {}]   ;;  %s1217_s3 = inlined_call_operand.vmem [shape: f32[1,32], index: 3, kind: input, shape index: {}]   ;;  %s1218_s4 = inlined_call_operand.hbm [shape: f32[2,8,32], index: 4, kind: output, shape index: {}]  }
   0x1   :  { %11 = vsyncpa [#allocation3 + $0x1], 0 }
   0x2   :  { %12 = vsyncpa [#allocation6], 0 }
   0x3   :  { %13 = vsyncpa [#allocation4], 0 }
   0x4   :  { %15 = vsyncpa [#allocation4 + $0x1], 0  ;;  %s1027_s15 = smov 0   ;;  %s1029_s16 = smov 0  }
   0x5   :  { %s1031_s17 = smov 0   ;;  %s1033_s18 = smov 0  }
   0x6 LB: > { %s152_s21 = sshll.u32 %s1215_s1, 4  ;;  %s1051_s22 = sadd.s32 4294967295, %s982_s18   ;;  %s982_s18 = sphi %s1033_s18, %s1229_s18   ;;  %s978_s17 = sphi %s1031_s17, %s1228_s17   ;;  %s974_s16 = sphi %s1029_s16, %s1227_s16   ;;  %s970_s15 = sphi %s1027_s15, %s1226_s15   ;;  %s153_s21 = int_to_ptr.hbm [resolvable:$true] %s152_s21 }
   0x7   : > { %p677_p0 = scmp.ge.s32.totalorder %s982_s18, 1  ;;  %p42_p1 = scmp.eq.s32.totalorder %s1051_s22, 0 }
   0x8   : > { %p141_p2 = scmp.lt.s32.totalorder %s982_s18, 3  ;;  %s984_s24 = smov [#allocation5]  }
   0x9   : > { %s154_s25 = sshll.u32 %s984_s24, 4  ;;  %s166_s28 = sshll.u32 %s1216_s2, 4  ;;  %s155_s25 = int_to_ptr.vmem [resolvable:$true] %s154_s25  ;;  %s167_s28 = int_to_ptr.hbm [resolvable:$true] %s166_s28 }
   0xa   : > { %p1056_p3 = pnand %p677_p0, %p141_p2  ;;  %s985_s29 = smov [#allocation7]  }
   0xb   : > { %s168_s30 = sshll.u32 %s985_s29, 4  ;;  %s986_s5 = smov 64   ;;  %s169_s30 = int_to_ptr.vmem [resolvable:$true] %s168_s30 }
   0xc   : > { %p734_p4 = pneg %p1056_p3  ;;  %s987_s6 = smov 4  }
   0xd   : > { %s676_s7 = sadd.s32 4294967294, %s982_s18   ;;  %s1070_s8 = sadd.s32 1, %s982_s18  }
   0xe   : > { %p735_p6 = pnand %p734_p4, %p42_p1  ;;  %s25_s9 = ssub.s32 %s982_s18, %s1070_s8 }
   0xf   : > { %s28_s10 = sadd.s32 1, %s978_s17  ;;  %p26_p7 = scmp.eq.s32.totalorder %s25_s9, 0 }
  0x10   : > { %737 = dma.hbm_to_vmem [thread:$0]  (!%p735_p6), %s153_s21, 256, %s155_s25, [#allocation6], %s986_s5, %s986_s5, %s987_s6  }
  0x11   : > { %740 = dma.hbm_to_vmem [thread:$0]  (!%p735_p6), %s167_s28, 256, %s169_s30, [#allocation6], %s986_s5, %s986_s5, %s987_s6  }
  0x12   : > { %p35_p8 = scmp.ne.s32.totalorder %s978_s17, %s974_s16  ;;  %p36_p9 = scmp.eq.s32.totalorder %s982_s18, 0 }
  0x13   : > { %p41_p10 = scmp.ne.s32.totalorder %s974_s16, %s970_s15  ;;  %p128_p13 = scmp.eq.s32.totalorder %s1051_s22, 1 }
  0x14   : > { %s1081_s11 = scalar_select %p26_p7, %s978_s17, %s28_s10  }
  0x15   : > { %p1083_p11 = por %p36_p9, %p35_p8  ;;  %p1089_p12 = por %p42_p1, %p41_p10 }
  0x16   : > { %p134_p0 = scmp.eq.s32.totalorder %s676_s7, 1  ;;  %p751_p2 = scmp.lt.s32.totalorder %s982_s18, 2 }
  0x17   : > { %s185_s14 = sand.u32 1, %s978_s17   ;;  %p1096_p4 = por %p128_p13, %p35_p8 }
  0x18   : > { %p1100_p6 = por %p134_p0, %p41_p10  ;;  %s681_s21 = sshll.u32 %s185_s14, 2 }
  0x19   : > { %s682_s24 = sshll.u32 %s982_s18, 2  ;;  %s189_s28 = scalar_lea.vmem [#allocation2], %s681_s21 }
  0x1a   : > { %s193_s27 = scalar_lea.hbm %s1214_s0, %s682_s24  ;;  %s197_s29 = sshll.u32 %s189_s28, 4  ;;  %s198_s29 = int_to_ptr.vmem [resolvable:$true] %s197_s29 }
  0x1b   : > { %s195_s30 = sshll.u32 %s193_s27, 4  ;;  %p1110_p7 = pnand %p751_p2, %p1083_p11  ;;  %s196_s30 = int_to_ptr.hbm [resolvable:$true] %s195_s30 }
  0x1c   : > { %s186_s6 = scalar_lea.sflag [#allocation3], %s185_s14  ;;  %s882_s7 = sshra.s32 %s196_s30, 4  ;;  %s883_s7 = int_to_ptr.hbm [resolvable:$true] %s882_s7 }
  0x1d   : > { %s884_s9 = scalar_lea.hbm %s883_s7, 4  ;;  %p886_p9 = pneg %p1110_p7 }
  0x1e   : > { %p885_p8 = scmp.ne.s32.totalorder %s883_s7, %s884_s9  ;;  %s889_s24 = scalar_lea.hbm %s1214_s0, 8 }
  0x1f   : > { %p890_p11 = scmp.lt.s32.totalorder %s883_s7, %s1214_s0  ;;  %p891_p0 = scmp.lt.s32.totalorder %s889_s24, %s884_s9 }
  0x20   : > { %p887_p10 = pnand %p886_p9, %p885_p8 }
  0x21   : > { %p892_p2 = por %p891_p0, %p890_p11 }
  0x22   : > { %p888_p13 = pneg %p887_p10 }
  0x24   : > { %p893_p5 = pnand %p892_p2, %p888_p13 }
  0x26   : > { %896 = shalt.err (!%p893_p5)
}
  0x27   : > { %744 = dma.hbm_to_vmem [thread:$0]  (!%p1110_p7), %s196_s30, 64, %s198_s29, %s186_s6  }
  0x28   : > { %206 = sbr.rel (%p1056_p3) target bundleno = 985 (0x3d9), region = 36  ;;  %s1127_s14 = sand.u32 (!%p1056_p3), 1, %s974_s16  }
  0x29   : > { %s684_s26 = sshll.u32 (!%p1056_p3), %s1127_s14, 2  ;;  %s209_s27 = scalar_lea.sflag (!%p1056_p3), [#allocation3], %s1127_s14 }
  0x2a   : > { %s212_s28 = scalar_lea.vmem (!%p1056_p3), [#allocation2], %s684_s26 }
  0x2d   : > { %957 = dma.done.wait (%p1089_p12), %s209_s27, 64  }
  0x2e   : > { %959 = vsyncadd (%p1089_p12), %s209_s27, 4294967232 }
  0x2f   : > { %961 = dma.done.wait (%p42_p1), [#allocation6], 512  }
  0x30   : > { %963 = vsyncadd (%p42_p1), [#allocation6], 4294966784  ;;  %v719_v0 = vld [vmem:[#allocation5 + $0x8] sm:$0xff]  ;;  %v718_v1 = vld [vmem:[#allocation5] sm:$0xff]  ;;  %vm266_vm0 = vcmask 261120   ;;  %s988_s23 = smov 96  }
  0x31   : > { %276 = vmatpush.bf16.msra.mxu0 %v719_v0  ;;  %v249_v2 = vld [vmem:[%s212_s28] sm:$0xf]  ;;  %s989_s13 = smov 104   ;;  %s990_s29 = smov 120   ;;  %vm291_vm1 = vcmask 64512   ;;  %vm326_vm2 = vcmask 1043456  }
  0x32   : > { %s991_s30 = smov 88   ;;  %s992_s5 = smov 80   ;;  %vm529_vm3 = vcmask 130048   ;;  %vm531_vm4 = vcmask 195584  }
  0x33   : > { %s993_s6 = smov 72   ;;  %s994_s7 = smov 112  }
  0x34   : > { %s995_s9 = smov 64   ;;  %s996_s10 = smov 56  }
  0x35   : > { %277 = vmatpush.bf16.msra.mxu0 %v718_v1  ;;  %s997_s21 = smov 48   ;;  %s998_s24 = smov 40  }
  0x36   : > { %s999_s25 = smov 8   ;;  %s1000_s12 = smov 16  }
  0x37   : > { %s1001_s26 = smov 24   ;;  %s715_s27 = sshll.u32 %s1051_s22, 3 }
  0x38   : > { %696 = vmatmul.msk.bf16.vlgmr.msra.gmra.mxu0 %vm266_vm0, %v249_v2  ;;  %s687_s28 = sshll.u32 %s1127_s14, 3  ;;  %s572_s22 = scalar_lea.sflag [#allocation4], %s1127_s14 }
  0xb5   : > { %v279_v3 = vpop.f32.mrf.mxu0 }
  0xb6   : > { %v283_v4 = vmul.f32 0.35355338, %v279_v3  ;;  %v285_v5 = vpack.c.bf16 %v279_v3, %v279_v3 }
  0xb8   : > { %v284_v6 = vpack.c.bf16 %v283_v4, %v283_v4  ;;  %v287_v7 = vunpack.c.l.b16 %v285_v5 }
  0xba   : > { %v1140_v8 = vpack.c.b16 %v287_v7, %v287_v7  ;;  %v346_v9 = vunpack.c.l.b16 %v284_v6 }
  0xbc   : > { %289 = vrot.lane.b32.xlu0 %v1140_v8, %s988_s23  ;;  %v347_v10 = vpack.c.b16 %v346_v9, %v346_v9 }
  0xbd   : > { %v281_v11 = vpop.f32.mrf.mxu0 }
  0xbe   : > { %460 = vrot.lane.b32.xlu2 %v347_v10, %s989_s13  ;;  %348 = vrot.lane.b32.xlu1 %v347_v10, %s990_s29  ;;  %s582_s29 = scalar_lea.hbm %s1218_s4, %s715_s27 }
  0xc4   : > { %350 = vrot.lane.b32.xlu0 %v1140_v8, %s991_s30 }
  0xc6   : > { %406 = vrot.lane.b32.xlu2 %v1140_v8, %s992_s5  ;;  %462 = vrot.lane.b32.xlu1 %v1140_v8, %s993_s6  ;;  %s247_s6 = scalar_lea.vmem [#allocation8], %s687_s28 }
  0xcc   : > { %404 = vrot.lane.b32.xlu0 %v347_v10, %s994_s7  ;;  %s584_s7 = sshll.u32 %s247_s6, 4  ;;  %s585_s7 = int_to_ptr.vmem [resolvable:$true] %s584_s7 }
  0xce   : > { %321 = vrot.lane.b32.xlu2 %v1140_v8, %s995_s9  ;;  %s586_s9 = sshll.u32 %s582_s29, 4  ;;  %s587_s9 = int_to_ptr.hbm [resolvable:$true] %s586_s9 }
  0xd6   : > { %381 = vrot.lane.b32.xlu2 %v1140_v8, %s996_s10  ;;  %s926_s10 = sshra.s32 %s587_s9, 4  ;;  %s927_s10 = int_to_ptr.hbm [resolvable:$true] %s926_s10 }
  0xd7   : > { %p933_p12 = scmp.lt.s32.totalorder %s927_s10, %s1218_s4 }
 0x118   : > { %v461_v12 = vpop.permute.xlu2 %460 }
 0x120   : > { %v407_v13 = vpop.permute.xlu2 %406 }
 0x121   : > { %v412_v14 = vsel %vm291_vm1, %v407_v13, 0 }
 0x122   : > { %421 = vmatpush.bf16.xpose.msrb.mxu0 %v412_v14 }
 0x128   : > { %v322_v15 = vpop.permute.xlu2 %321 }
 0x129   : > { %v328_v16 = vsel %vm326_vm2, %v322_v15, 0 }
 0x12a   : > { %337 = vmatpush.bf16.msra.mxu2 %v328_v16 }
 0x12e   : > { %v290_v17 = vpop.permute.xlu0 %289 }
 0x12f   : > { %v296_v18 = vsel %vm291_vm1, %v290_v17, 0 }
 0x130   : > { %305 = vmatpush.bf16.xpose.msra.mxu1 %v296_v18  ;;  %v382_v19 = vpop.permute.xlu2 %381  ;;  %v349_v20 = vpop.permute.xlu1 %348 }
 0x131   : > { %v387_v21 = vsel %vm326_vm2, %v382_v19, 0 }
 0x132   : > { %396 = vmatpush.bf16.msrb.mxu2 %v387_v21  ;;  %v720_v21 = vld [vmem:[#allocation7] sm:$0xff] }
 0x136   : > { %v351_v22 = vpop.permute.xlu0 %350 }
 0x137   : > { %697 = vmatmul.msk.bf16.vlgmr.msra.gmra.mxu1 %vm291_vm1, %v284_v6  ;;  %v356_v23 = vsel %vm291_vm1, %v351_v22, 0 }
 0x138   : > { %365 = vmatpush.bf16.xpose.msra.mxu3 %v356_v23  ;;  %v463_v24 = vpop.permute.xlu1 %462 }
 0x139   : > { %v468_v25 = vsel %vm291_vm1, %v463_v24, 0 }
 0x13e   : > { %v405_v26 = vpop.permute.xlu0 %404 }
 0x13f   : > { %699 = vmatmul.msk.bf16.vlgmr.msra.gmra.mxu3 %vm291_vm1, %v349_v20  ;;  %701 = vmatmul.msk.bf16.vlgmr.msrb.gmra.mxu0 %vm291_vm1, %v405_v26  ;;  %v721_v20 = vld [vmem:[#allocation7 + $0x8] sm:$0xff] }
 0x140   : > { %477 = vmatpush.bf16.xpose.msrb.mxu3 %v468_v25  ;;  %563 = vmatpush.bf16.msra.mxu0 %v721_v20 }
 0x144   : > { %564 = vmatpush.bf16.msra.mxu0 %v720_v21 }
 0x14f   : > { %703 = vmatmul.msk.bf16.vlgmr.msrb.gmra.mxu3 %vm291_vm1, %v461_v12 }
 0x1b4   : > { %v307_v27 = vpop.f32.mrf.mxu1 }
 0x1b5   : > { %v311_v28 = vsel %vm291_vm1, %v307_v27, -inf }
 0x1b6   : > { %312 = vmax.xlane.f32.xlu1 %v311_v28 }
 0x1bc   : > { %v309_v29 = vpop.f32.mrf.mxu1  ;;  %v423_v30 = vpop.f32.mrf.mxu0 }
 0x1bd   : > { %v427_v31 = vsel %vm291_vm1, %v423_v30, -inf }
 0x1be   : > { %428 = vmax.xlane.f32.xlu1 %v427_v31 }
 0x1c2   : > { %v367_v32 = vpop.f32.mrf.mxu3 }
 0x1c3   : > { %v371_v33 = vsel %vm291_vm1, %v367_v32, -inf }
 0x1c4   : > { %372 = vmax.xlane.f32.xlu0 %v371_v33  ;;  %v425_v34 = vpop.f32.mrf.mxu0 }
 0x1ca   : > { %v369_v35 = vpop.f32.mrf.mxu3 }
 0x1d2   : > { %v479_v36 = vpop.f32.mrf.mxu3 }
 0x1d3   : > { %v483_v37 = vsel %vm291_vm1, %v479_v36, -inf }
 0x1d4   : > { %484 = vmax.xlane.f32.xlu2 %v483_v37 }
 0x1d7   : > { %437 = vrot.lane.b32.xlu1 %v1140_v8, %s997_s21  ;;  %s928_s21 = scalar_lea.hbm %s927_s10, 8 }
 0x1d8   : > { %493 = vrot.lane.b32.xlu0 %v1140_v8, %s998_s24  ;;  %p929_p1 = scmp.ne.s32.totalorder %s927_s10, %s928_s21 }
 0x1da   : > { %v481_v38 = vpop.f32.mrf.mxu3  ;;  %p930_p3 = pnand %p929_p1, %p1096_p4 }
 0x1dc   : > { %p931_p5 = pneg %p930_p3 }
 0x229   : > { %v313_v39 = vpop.xlane.xlu1 %312 }
 0x22a   : > { %v314_v40 = vsub.f32 %v307_v27, %v313_v39 }
 0x22c   : > { %v315_v41 = vmul.f32 1.442695, %v314_v40 }
 0x22e   : > { %806 = vpow2.f32 %v315_v41 }
 0x231   : > { %v429_v44 = vpop.xlane.xlu1 %428 }
 0x232   : > { %v430_v47 = vsub.f32 %v423_v30, %v429_v44 }
 0x234   : > { %v807_v42 = vpop.eup %806  ;;  %v431_v49 = vmul.f32 1.442695, %v430_v47 }
 0x235   : > { %v320_v43 = vpack.c.bf16 %v807_v42, %v807_v42  ;;  %v317_v1 = vsel %vm291_vm1, %v807_v42, 0.0 }
 0x237   : > { %v373_v45 = vpop.xlane.xlu0 %372  ;;  %698 = vmatmul.msk.bf16.vlgmr.msra.gmra.mxu2 %vm291_vm1, %v320_v43 }
 0x238   : > { %v374_v46 = vsub.f32 %v367_v32, %v373_v45  ;;  %v805_v32 = vld [vmem:[%s1217_s3] ss:$0 sm:$0xff] }
 0x23a   : > { %v375_v48 = vmul.f32 1.442695, %v374_v46 }
 0x23c   : > { %808 = vpow2.f32 %v375_v48 }
 0x23d   : > { %810 = vpow2.f32 %v431_v49 }
 0x242   : > { %v809_v50 = vpop.eup %808 }
 0x243   : > { %v377_v51 = vsel %vm291_vm1, %v809_v50, 0.0  ;;  %v380_v52 = vpack.c.bf16 %v809_v50, %v809_v50  ;;  %v811_v54 = vpop.eup %810 }
 0x244   : > { %378 = vadd.xlane.f32.xlu2 %v377_v51  ;;  %v433_v61 = vsel %vm291_vm1, %v811_v54, 0.0  ;;  %v436_v62 = vpack.c.bf16 %v811_v54, %v811_v54 }
 0x247   : > { %v485_v53 = vpop.xlane.xlu2 %484  ;;  %700 = vmatmul.msk.bf16.vlgmr.msrb.gmra.mxu2 %vm291_vm1, %v380_v52 }
 0x248   : > { %v486_v55 = vsub.f32 %v479_v36, %v485_v53 }
 0x249   : > { %v438_v56 = vpop.permute.xlu1 %437 }
 0x24a   : > { %v487_v57 = vmul.f32 1.442695, %v486_v55  ;;  %v494_v58 = vpop.permute.xlu0 %493  ;;  %v443_v59 = vsel %vm326_vm2, %v438_v56, 0 }
 0x24b   : > { %v499_v60 = vsel %vm326_vm2, %v494_v58, 0  ;;  %452 = vmatpush.bf16.msrb.mxu1 %v443_v59 }
 0x24c   : > { %812 = vpow2.f32 %v487_v57  ;;  %508 = vmatpush.bf16.msra.mxu2 %v499_v60  ;;  %434 = vadd.xlane.f32.xlu2 %v433_v61 }
 0x24e   : > { %702 = vmatmul.msk.bf16.vlgmr.msrb.gmra.mxu1 %vm291_vm1, %v436_v62 }
 0x252   : > { %v813_v63 = vpop.eup %812 }
 0x253   : > { %v489_v0 = vsel %vm291_vm1, %v813_v63, 0.0  ;;  %v492_v2 = vpack.c.bf16 %v813_v63, %v813_v63 }
 0x254   : > { %490 = vadd.xlane.f32.xlu0 %v489_v0  ;;  %318 = vadd.xlane.f32.xlu2 %v317_v1 }
 0x257   : > { %704 = vmatmul.msk.bf16.vlgmr.msra.gmra.mxu2 %vm291_vm1, %v492_v2 }
 0x2b7   : > { %v379_v3 = vpop.xlane.xlu2 %378 }
 0x2b8   : > { %814 = vrcp.f32 %v379_v3 }
 0x2ba   : > { %v339_v4 = vpop.f32.mrf.mxu2 }
 0x2be   : > { %v815_v7 = vpop.eup %814 }
 0x2bf   : > { %v435_v5 = vpop.xlane.xlu2 %434 }
 0x2c0   : > { %816 = vrcp.f32 %v435_v5 }
 0x2c2   : > { %v341_v6 = vpop.f32.mrf.mxu2 }
 0x2c6   : > { %v817_v9 = vpop.eup %816 }
 0x2c7   : > { %v491_v13 = vpop.xlane.xlu0 %490  ;;  %v319_v22 = vpop.xlane.xlu2 %318 }
 0x2c8   : > { %818 = vrcp.f32 %v491_v13 }
 0x2c9   : > { %820 = vrcp.f32 %v319_v22 }
 0x2ca   : > { %v398_v8 = vpop.f32.mrf.mxu2 }
 0x2cb   : > { %v403_v10 = vmul.f32 %v815_v7, %v398_v8  ;;  %v454_v11 = vpop.f32.mrf.mxu1 }
 0x2cc   : > { %v459_v12 = vmul.f32 %v817_v9, %v454_v11 }
 0x2cd   : > { %517 = vrot.lane.b32.xlu1 %v403_v10, %s999_s25 }
 0x2ce   : > { %521 = vrot.lane.b32.xlu2 %v459_v12, %s1000_s12  ;;  %v819_v16 = vpop.eup %818  ;;  %s932_s12 = scalar_lea.hbm %s1218_s4, 16 }
 0x2cf   : > { %v821_v23 = vpop.eup %820  ;;  %p934_p7 = scmp.lt.s32.totalorder %s932_s12, %s928_s21 }
 0x2d0   : > { %v344_v25 = vmul.f32 %v821_v23, %v339_v4 }
 0x2d1   : > { %p935_p8 = por %p934_p7, %p933_p12 }
 0x2d2   : > { %v400_v14 = vpop.f32.mrf.mxu2 }
 0x2d3   : > { %v456_v15 = vpop.f32.mrf.mxu1  ;;  %p936_p9 = pnand %p935_p8, %p931_p5 }
 0x2da   : > { %v510_v17 = vpop.f32.mrf.mxu2 }
 0x2db   : > { %v515_v18 = vmul.f32 %v819_v16, %v510_v17 }
 0x2dd   : > { %525 = vrot.lane.b32.xlu1 %v515_v18, %s1001_s26 }
 0x2e2   : > { %v512_v19 = vpop.f32.mrf.mxu2 }
 0x328   : > { %v522_v27 = vpop.permute.xlu2 %521 }
 0x33f   : > { %v518_v24 = vpop.permute.xlu1 %517 }
 0x340   : > { %v528_v26 = vsel %vm291_vm1, %v344_v25, %v518_v24 }
 0x341   : > { %v530_v28 = vsel %vm529_vm3, %v528_v26, %v522_v27 }
 0x34f   : > { %v526_v29 = vpop.permute.xlu1 %525 }
 0x350   : > { %v532_v30 = vsel %vm531_vm4, %v530_v28, %v526_v29 }
 0x351   : > { %v533_v31 = vpack.c.bf16 %v532_v30, %v532_v30 }
 0x353   : > { %713 = vmatmul.msk.bf16.vlgmr.msra.gmra.mxu0 %vm266_vm0, %v533_v31 }
 0x3d0   : > { %v566_v33 = vpop.f32.mrf.mxu0 }
 0x3d1   : > { %v567_v34 = vadd.f32 %v805_v32, %v566_v33 }
 0x3d3   : > { %570 = vst.msk [vmem:[%s247_s6] sm:$0xff] %vm266_vm0, %v567_v34 }
 0x3d4   : > { %939 = shalt.err (!%p936_p9)
}
 0x3d5   : > { %732 = dma.vmem_to_hbm [thread:$0]  (%p1096_p4), %s585_s7, 128, %s587_s9, %s572_s22  }
 0x3d8   : > { %v568_v35 = vpop.f32.mrf.mxu0 }
 0x3d9 PF: > { %s598_s14 = sand.u32 1, %s970_s15   ;;  %p1225_p10 = scmp.ge.s32.totalorder %s982_s18, 2 }
 0x3da   : > { %s599_s28 = scalar_lea.sflag [#allocation4], %s598_s14 }
 0x3db   : > { %p746_p13 = pnand %p1225_p10, %p1100_p6 }
 0x3dd   : > { %p747_p11 = pneg %p746_p13 }
 0x3df   : > { %965 = dma.done.wait (%p747_p11), %s599_s28, 128  }
 0x3e0   : > { %967 = vsyncadd (%p747_p11), %s599_s28, 4294967168  ;;  %p18_p0 = scmp.ge.s32.totalorder %s1070_s8, 4   ;;  %s1226_s15 = smov %s974_s16 }
 0x3e1   : > { %s1227_s16 = smov %s978_s17  ;;  %s1228_s17 = smov %s1081_s11 }
 0x3e2   : > { %s1229_s18 = smov %s1070_s8  ;;  %20 = sbr.rel (!%p18_p0) target bundleno = 6 (0x6), region = 89 }
 0x3e7   :  { %605 = vsyncpa [#allocation3], 1 }
 0x3e8   :  { %607 = vsyncpa [#allocation3 + $0x1], 1 }
 0x3e9   :  { %608 = vsyncpa [#allocation6], 1 }
 0x3ea   :  { %609 = vsyncpa [#allocation4], 1 }
 0x3eb   :  { %611 = vsyncpa [#allocation4 + $0x1], 1 }

</bundles_post_ra>
